<compile_context>
chip_gen: v7x
topology: tpu7x:2x2x1
jax: 0.10.0
libtpu: 0.0.40
codegen_flags: <defaults>
</compile_context>

<pallas_src>
import functools

import jax
import jax.numpy as jnp
import numpy as np
from jax.experimental import pallas as pl
from jax.experimental.pallas import tpu as pltpu


def sagela_kernel(adj_ref, adjt_ref, x_ref, rb_ref, al_ref, uab_ref,
                  w13_ref, w23_ref, ae_ref, out_ref, *, matmul_dtype):
    # adj_ref, adjt_ref : (tm, N)     row tile of adj (with self loops) / adj.T
    # x_ref             : (1, N, Cin) full node features for this batch element
    # rb_ref            : (1, 1, N)   (X @ alpha_right).T + bias  (per batch)
    # al_ref            : (1, Cin)    alpha_left row
    # uab_ref           : (2, Cin)    [u0 + u2, u1 + u2]
    # w13_ref, w23_ref  : (Cin, Cout) weight1 @ w3_top, weight2 @ w3_bot
    # ae_ref            : (2,) SMEM   [ae0 + ae2, ae1 + ae2]
    # out_ref           : (1, tm, Cout)
    tm = adj_ref.shape[0]
    row0 = pl.multiple_of(pl.program_id(1) * tm, tm)

    adj = adj_ref[...]                             # (tm, N)
    adjt = adjt_ref[...]                           # (tm, N)
    x_full = x_ref[0]                              # (N, Cin)
    x_tile = x_ref[0, pl.ds(row0, tm), :]          # (tm, Cin)  rows of this tile
    rb = rb_ref[0]                                 # (1, N)

    # lam[i, j] = sigmoid(x[i].alpha_l + x[j].alpha_r + lam_edge[i, j] + bias)
    left = jnp.sum(x_tile * al_ref[...], axis=-1, keepdims=True)    # (tm, 1) VPU
    lam_edge = adj * ae_ref[0] + adjt * ae_ref[1]                   # folded 3rd channel
    lam = jax.nn.sigmoid(left + rb + lam_edge)
    lam = jnp.where(adj + adjt > 0, lam, 0.0)      # mask to existing edges

    # aggr[i, c] = sum_j lam[i,j] * amplifier[i,j,c] * x[j,c]
    #            = (lam*adj @ x) * (u0+u2) + (lam*adj.T @ x) * (u1+u2)
    x_mm = x_full.astype(matmul_dtype)
    a1 = jnp.dot((lam * adj).astype(matmul_dtype), x_mm,
                 preferred_element_type=jnp.float32)
    a2 = jnp.dot((lam * adjt).astype(matmul_dtype), x_mm,
                 preferred_element_type=jnp.float32)
    aggr = a1 * uab_ref[0:1, :] + a2 * uab_ref[1:2, :]              # (tm, Cin)

    out = (jnp.dot(x_tile.astype(matmul_dtype), w13_ref[...],
                   preferred_element_type=jnp.float32)
           + jnp.dot(aggr.astype(matmul_dtype), w23_ref[...],
                     preferred_element_type=jnp.float32))
    out_ref[0] = out.astype(out_ref.dtype)


def _pick_row_tile(n):
    """Largest node-row tile whose VMEM working set fits every TPU generation.

    Per (row, col) element of an adjacency row tile the kernel holds roughly
    adj + adj.T blocks double-buffered (16 B) plus lam and the two masked
    bf16 matmul operands (~16 B) -> ~32 B/elem.  Target ~40 MiB so the
    pipeline still double-buffers comfortably under v7x's 64 MiB VMEM
    (v5e/v6e have 128 MiB and get the same, still-large tile).
    """
    budget_elems = (40 * 1024 * 1024) // 32
    for tm in (1024, 512, 256, 128, 64, 32, 16, 8):
        if n % tm == 0 and tm * n <= budget_elems:
            return tm
    return n  # small or oddly-sized N: fall back to a single row tile


def sagela_forward(X, A, params, add_self_loop=True, matmul_dtype=jnp.bfloat16):
    B, N, Cin = X.shape
    Cout = params["weight1"].shape[1]

    adj = A
    if add_self_loop:
        idx = jnp.arange(N)
        adj = adj.at[idx, idx].set(1.0)
    adjt = adj.T

    # --- batch-invariant parameter folding (tiny one-off XLA work) ---
    ae = params["alpha_edge"].reshape(3)
    ae_fold = jnp.stack([ae[0] + ae[2], ae[1] + ae[2]])              # (2,)
    u = params["u"]
    u_fold = jnp.stack([u[0] + u[2], u[1] + u[2]])                   # (2, Cin)
    w13 = (params["weight1"] @ params["weight3"][:Cout]).astype(matmul_dtype)
    w23 = (params["weight2"] @ params["weight3"][Cout:]).astype(matmul_dtype)
    al_row = params["alpha_node"][:Cin].T                            # (1, Cin)
    # Right attention term + bias, one lane-dense row per batch element
    # (replaces the old full (B, Cin, N) X^T input).
    rb = jnp.swapaxes(X @ params["alpha_node"][Cin:], 1, 2) + params["bias"][0]

    tm = _pick_row_tile(N)
    grid = (B, N // tm)

    kernel = functools.partial(sagela_kernel, matmul_dtype=matmul_dtype)
    return pl.pallas_call(
        kernel,
        out_shape=jax.ShapeDtypeStruct((B, N, Cout), X.dtype),
        grid=grid,
        in_specs=[
            pl.BlockSpec((tm, N), lambda b, i: (i, 0)),          # adj rows
            pl.BlockSpec((tm, N), lambda b, i: (i, 0)),          # adj.T rows
            pl.BlockSpec((1, N, Cin), lambda b, i: (b, 0, 0)),   # X (all nodes)
            pl.BlockSpec((1, 1, N), lambda b, i: (b, 0, 0)),     # right + bias
            pl.BlockSpec((1, Cin), lambda b, i: (0, 0)),         # alpha_left
            pl.BlockSpec((2, Cin), lambda b, i: (0, 0)),         # folded u
            pl.BlockSpec((Cin, Cout), lambda b, i: (0, 0)),      # W1 @ W3_top
            pl.BlockSpec((Cin, Cout), lambda b, i: (0, 0)),      # W2 @ W3_bot
            pl.BlockSpec(memory_space=pltpu.SMEM),               # folded alpha_edge
        ],
        out_specs=pl.BlockSpec((1, tm, Cout), lambda b, i: (b, i, 0)),
        compiler_params=pltpu.CompilerParams(
            dimension_semantics=("parallel", "parallel"),
            vmem_limit_bytes=48 * 1024 * 1024,
        ),
    )(adj, adjt, X, rb, al_row, u_fold, w13, w23, ae_fold)


def sagela_ref(X, A, p, add_self_loop=True):
    """Pure-JAX reference mirroring the PyTorch forward exactly (f32)."""
    B, N, Cin = X.shape
    adj = A
    if add_self_loop:
        idx = jnp.arange(N)
        adj = adj.at[idx, idx].set(1.0)
    e = jnp.stack([adj, adj.T, adj + adj.T], axis=2)             # (N, N, 3)
    lam_edge = jnp.matmul(e, p["alpha_edge"])[..., 0]            # (N, N)
    lam_left = X @ p["alpha_node"][:Cin]                         # (B, N, 1)
    lam_right = X @ p["alpha_node"][Cin:]                        # (B, N, 1)
    lam = lam_left + jnp.transpose(lam_right, (0, 2, 1)) + lam_edge[None]
    lam = jax.nn.sigmoid(lam + p["bias"][0])
    lam = jnp.where(e[:, :, -1][None] > 0, lam, 0.0)
    amplifier = jnp.matmul(e, p["u"])                            # (N, N, Cin)
    aggr = jnp.einsum("ijc,bjc->bijc", amplifier, X)
    aggr = jnp.einsum("bij,bijc->bic", lam, aggr)
    aggr = aggr @ p["weight2"]
    res = X @ p["weight1"]
    return jnp.concatenate([res, aggr], axis=-1) @ p["weight3"]


def xavier_uniform(key, shape, gain=1.414):
    fan_in, fan_out = shape[0], shape[1]
    a = gain * float(np.sqrt(6.0 / (fan_in + fan_out)))
    return jax.random.uniform(key, shape, jnp.float32, -a, a)


if __name__ == "__main__":
    key = jax.random.PRNGKey(0)
    B, N, Cin, Cout = 2, 16, 8, 32
    keys = jax.random.split(key, 8)

    params = {
        "weight1": xavier_uniform(keys[0], (Cin, Cout)),
        "weight2": xavier_uniform(keys[1], (Cin, Cout)),
        "weight3": xavier_uniform(keys[2], (2 * Cout, Cout)),
        "u": xavier_uniform(keys[3], (3, Cin)),
        "alpha_node": xavier_uniform(keys[4], (2 * Cin, 1)),
        "alpha_edge": xavier_uniform(keys[5], (3, 1)),
        "bias": jnp.zeros((1,), jnp.float32),
    }
    X = jax.random.normal(keys[6], (B, N, Cin), jnp.float32)
    A = (jax.random.uniform(keys[7], (N, N)) > 0.6).astype(jnp.float32)

    ref = sagela_ref(X, A, params)

    # f32-MXU path: differences vs the reference come only from the algebraic
    # refolding (edge-channel / W3 folds), i.e. fp reassociation noise.
    out_f32 = jax.block_until_ready(
        sagela_forward(X, A, params, matmul_dtype=jnp.float32))
    np.testing.assert_allclose(np.asarray(out_f32), np.asarray(ref),
                               rtol=1e-4, atol=1e-4)

    # Default bf16-MXU path (f32 accumulation) -> looser tolerance for the
    # bf16 operand rounding, as flagged in the perf review.
    out_bf16 = jax.block_until_ready(sagela_forward(X, A, params))
    np.testing.assert_allclose(np.asarray(out_bf16), np.asarray(ref),
                               rtol=5e-2, atol=5e-2)
    print("KERNEL_OK")
</pallas_src>

<mosaic_0001>
module attributes {stable_mosaic.version = 11 : i64} {
  func.func @sagela_kernel(%arg0: i32, %arg1: i32, %arg2: memref<16x16xf32, #tpu.memory_space<vmem>>, %arg3: memref<16x16xf32, #tpu.memory_space<vmem>>, %arg4: memref<1x16x8xf32, #tpu.memory_space<vmem>>, %arg5: memref<1x1x16xf32, #tpu.memory_space<vmem>>, %arg6: memref<1x8xf32, #tpu.memory_space<vmem>>, %arg7: memref<2x8xf32, #tpu.memory_space<vmem>>, %arg8: memref<8x32xf32, #tpu.memory_space<vmem>>, %arg9: memref<8x32xf32, #tpu.memory_space<vmem>>, %arg10: memref<2xf32, #tpu.memory_space<smem>>, %arg11: memref<1x16x32xf32, #tpu.memory_space<vmem>>) attributes {dimension_semantics = [#tpu.dimension_semantics<parallel>, #tpu.dimension_semantics<parallel>], iteration_bounds = array<i64: 2, 1>, scalar_prefetch = 0 : i64, scratch_operands = 0 : i64, tpu.core_type = #tpu.core_type<tc>, window_params = [{transform_indices = @transform_0, window_bounds = array<i64: 16, 16>}, {transform_indices = @transform_1, window_bounds = array<i64: 16, 16>}, {transform_indices = @transform_2, window_bounds = array<i64: 1, 16, 8>}, {transform_indices = @transform_3, window_bounds = array<i64: 1, 1, 16>}, {pipeline_mode = #tpu.pipeline_mode<synchronous>, transform_indices = @transform_4, window_bounds = array<i64: 1, 8>}, {pipeline_mode = #tpu.pipeline_mode<synchronous>, transform_indices = @transform_5, window_bounds = array<i64: 2, 8>}, {pipeline_mode = #tpu.pipeline_mode<synchronous>, transform_indices = @transform_6, window_bounds = array<i64: 8, 32>}, {pipeline_mode = #tpu.pipeline_mode<synchronous>, transform_indices = @transform_7, window_bounds = array<i64: 8, 32>}, {transform_indices = @transform_8, window_bounds = array<i64: 2>}, {transform_indices = @transform_9, window_bounds = array<i64: 1, 16, 32>}]} {
    %c16_i32 = arith.constant 16 : i32
    %0 = arith.muli %arg1, %c16_i32 : i32
    %1 = tpu.assume_multiple %0, 16 : i32
    %c0 = arith.constant 0 : index
    %c0_0 = arith.constant 0 : index
    %2 = vector.load %arg2[%c0, %c0_0] : memref<16x16xf32, #tpu.memory_space<vmem>>, vector<16x16xf32>
    %c0_1 = arith.constant 0 : index
    %c0_2 = arith.constant 0 : index
    %3 = vector.load %arg3[%c0_1, %c0_2] : memref<16x16xf32, #tpu.memory_space<vmem>>, vector<16x16xf32>
    %c0_3 = arith.constant 0 : index
    %c0_4 = arith.constant 0 : index
    %c0_5 = arith.constant 0 : index
    %4 = vector.load %arg4[%c0_3, %c0_4, %c0_5] : memref<1x16x8xf32, #tpu.memory_space<vmem>>, vector<1x16x8xf32>
    %5 = vector.shape_cast %4 : vector<1x16x8xf32> to vector<16x8xf32>
    %c0_6 = arith.constant 0 : index
    %6 = arith.index_cast %1 : i32 to index
    %c0_7 = arith.constant 0 : index
    %7 = vector.load %arg4[%c0_6, %6, %c0_7] : memref<1x16x8xf32, #tpu.memory_space<vmem>>, vector<1x16x8xf32>
    %8 = vector.shape_cast %7 : vector<1x16x8xf32> to vector<16x8xf32>
    %c0_8 = arith.constant 0 : index
    %c0_9 = arith.constant 0 : index
    %c0_10 = arith.constant 0 : index
    %9 = vector.load %arg5[%c0_8, %c0_9, %c0_10] : memref<1x1x16xf32, #tpu.memory_space<vmem>>, vector<1x1x16xf32>
    %10 = vector.shape_cast %9 : vector<1x1x16xf32> to vector<1x16xf32>
    %c0_11 = arith.constant 0 : index
    %c0_12 = arith.constant 0 : index
    %11 = vector.load %arg6[%c0_11, %c0_12] : memref<1x8xf32, #tpu.memory_space<vmem>>, vector<1x8xf32>
    %12 = vector.broadcast %11 : vector<1x8xf32> to vector<16x8xf32>
    %13 = arith.mulf %8, %12 : vector<16x8xf32>
    %cst = arith.constant dense<0.000000e+00> : vector<16xf32>
    %14 = vector.multi_reduction <add>, %13, %cst [1] : vector<16x8xf32> to vector<16xf32>
    %15 = vector.shape_cast %14 : vector<16xf32> to vector<16x1xf32>
    %c0_13 = arith.constant 0 : index
    %16 = memref.load %arg10[%c0_13] : memref<2xf32, #tpu.memory_space<smem>>
    %17 = vector.broadcast %16 : f32 to vector<16x16xf32>
    %18 = arith.mulf %2, %17 : vector<16x16xf32>
    %c1 = arith.constant 1 : index
    %19 = memref.load %arg10[%c1] : memref<2xf32, #tpu.memory_space<smem>>
    %20 = vector.broadcast %19 : f32 to vector<16x16xf32>
    %21 = arith.mulf %3, %20 : vector<16x16xf32>
    %22 = arith.addf %18, %21 : vector<16x16xf32>
    %23 = vector.broadcast %15 : vector<16x1xf32> to vector<16x16xf32>
    %24 = vector.broadcast %10 : vector<1x16xf32> to vector<16x16xf32>
    %25 = arith.addf %23, %24 : vector<16x16xf32>
    %26 = arith.addf %25, %22 : vector<16x16xf32>
    %27 = arith.negf %26 : vector<16x16xf32>
    %28 = math.exp %27 : vector<16x16xf32>
    %cst_14 = arith.constant 1.000000e+00 : f32
    %29 = vector.broadcast %cst_14 : f32 to vector<16x16xf32>
    %30 = arith.addf %29, %28 : vector<16x16xf32>
    %31 = arith.divf %29, %30 : vector<16x16xf32>
    %32 = arith.addf %2, %3 : vector<16x16xf32>
    %cst_15 = arith.constant 0.000000e+00 : f32
    %33 = vector.broadcast %cst_15 : f32 to vector<16x16xf32>
    %34 = arith.cmpf ogt, %32, %33 : vector<16x16xf32>
    %cst_16 = arith.constant 0.000000e+00 : f32
    %35 = vector.broadcast %cst_16 : f32 to vector<16x16xf32>
    %36 = arith.select %34, %31, %35 : vector<16x16xi1>, vector<16x16xf32>
    %37 = arith.mulf %36, %2 : vector<16x16xf32>
    %cst_17 = arith.constant dense<0.000000e+00> : vector<16x8xf32>
    %38 = tpu.matmul %37, %5, %cst_17 {dimension_numbers = #tpu.dot_dimension_numbers<[1], [0], [0], [1], [0, 0, 1, 1], [], []>} : vector<16x16xf32>, vector<16x8xf32>, vector<16x8xf32> -> vector<16x8xf32>
    %39 = arith.mulf %36, %3 : vector<16x16xf32>
    %cst_18 = arith.constant dense<0.000000e+00> : vector<16x8xf32>
    %40 = tpu.matmul %39, %5, %cst_18 {dimension_numbers = #tpu.dot_dimension_numbers<[1], [0], [0], [1], [0, 0, 1, 1], [], []>} : vector<16x16xf32>, vector<16x8xf32>, vector<16x8xf32> -> vector<16x8xf32>
    %c0_19 = arith.constant 0 : index
    %c0_20 = arith.constant 0 : index
    %41 = vector.load %arg7[%c0_19, %c0_20] : memref<2x8xf32, #tpu.memory_space<vmem>>, vector<1x8xf32>
    %42 = vector.broadcast %41 : vector<1x8xf32> to vector<16x8xf32>
    %43 = arith.mulf %38, %42 : vector<16x8xf32>
    %c1_21 = arith.constant 1 : index
    %c0_22 = arith.constant 0 : index
    %44 = vector.load %arg7[%c1_21, %c0_22] : memref<2x8xf32, #tpu.memory_space<vmem>>, vector<1x8xf32>
    %45 = vector.broadcast %44 : vector<1x8xf32> to vector<16x8xf32>
    %46 = arith.mulf %40, %45 : vector<16x8xf32>
    %47 = arith.addf %43, %46 : vector<16x8xf32>
    %c0_23 = arith.constant 0 : index
    %c0_24 = arith.constant 0 : index
    %48 = vector.load %arg8[%c0_23, %c0_24] : memref<8x32xf32, #tpu.memory_space<vmem>>, vector<8x32xf32>
    %cst_25 = arith.constant dense<0.000000e+00> : vector<16x32xf32>
    %49 = tpu.matmul %8, %48, %cst_25 {dimension_numbers = #tpu.dot_dimension_numbers<[1], [0], [0], [1], [0, 0, 1, 1], [], []>} : vector<16x8xf32>, vector<8x32xf32>, vector<16x32xf32> -> vector<16x32xf32>
    %c0_26 = arith.constant 0 : index
    %c0_27 = arith.constant 0 : index
    %50 = vector.load %arg9[%c0_26, %c0_27] : memref<8x32xf32, #tpu.memory_space<vmem>>, vector<8x32xf32>
    %cst_28 = arith.constant dense<0.000000e+00> : vector<16x32xf32>
    %51 = tpu.matmul %47, %50, %cst_28 {dimension_numbers = #tpu.dot_dimension_numbers<[1], [0], [0], [1], [0, 0, 1, 1], [], []>} : vector<16x8xf32>, vector<8x32xf32>, vector<16x32xf32> -> vector<16x32xf32>
    %52 = arith.addf %49, %51 : vector<16x32xf32>
    %c0_29 = arith.constant 0 : index
    %c0_30 = arith.constant 0 : index
    %c0_31 = arith.constant 0 : index
    %53 = vector.load %arg11[%c0_29, %c0_30, %c0_31] : memref<1x16x32xf32, #tpu.memory_space<vmem>>, vector<1x16x32xf32>
    %54 = vector.shape_cast %53 : vector<1x16x32xf32> to vector<16x32xf32>
    %55 = vector.shape_cast %52 : vector<16x32xf32> to vector<1x16x32xf32>
    tpu.vector_store %arg11[%c0_29, %c0_30, %c0_31], %55 {strides = array<i32>} : memref<1x16x32xf32, #tpu.memory_space<vmem>>, vector<1x16x32xf32>,
    return
  }
  func.func @transform_0(%arg0: i32, %arg1: i32) -> (i32, i32) {
    %c0_i32 = arith.constant 0 : i32
    %c0_i32_0 = arith.constant 0 : i32
    return %arg1, %c0_i32 : i32, i32
  }
  func.func @transform_1(%arg0: i32, %arg1: i32) -> (i32, i32) {
    %c0_i32 = arith.constant 0 : i32
    %c0_i32_0 = arith.constant 0 : i32
    return %arg1, %c0_i32 : i32, i32
  }
  func.func @transform_2(%arg0: i32, %arg1: i32) -> (i32, i32, i32) {
    %c0_i32 = arith.constant 0 : i32
    %c0_i32_0 = arith.constant 0 : i32
    %c0_i32_1 = arith.constant 0 : i32
    return %arg0, %c0_i32, %c0_i32_0 : i32, i32, i32
  }
  func.func @transform_3(%arg0: i32, %arg1: i32) -> (i32, i32, i32) {
    %c0_i32 = arith.constant 0 : i32
    %c0_i32_0 = arith.constant 0 : i32
    %c0_i32_1 = arith.constant 0 : i32
    return %arg0, %c0_i32, %c0_i32_0 : i32, i32, i32
  }
  func.func @transform_4(%arg0: i32, %arg1: i32) -> (i32, i32) {
    %c0_i32 = arith.constant 0 : i32
    %c0_i32_0 = arith.constant 0 : i32
    %c0_i32_1 = arith.constant 0 : i32
    return %c0_i32, %c0_i32_0 : i32, i32
  }
  func.func @transform_5(%arg0: i32, %arg1: i32) -> (i32, i32) {
    %c0_i32 = arith.constant 0 : i32
    %c0_i32_0 = arith.constant 0 : i32
    %c0_i32_1 = arith.constant 0 : i32
    return %c0_i32, %c0_i32_0 : i32, i32
  }
  func.func @transform_6(%arg0: i32, %arg1: i32) -> (i32, i32) {
    %c0_i32 = arith.constant 0 : i32
    %c0_i32_0 = arith.constant 0 : i32
    %c0_i32_1 = arith.constant 0 : i32
    return %c0_i32, %c0_i32_0 : i32, i32
  }
  func.func @transform_7(%arg0: i32, %arg1: i32) -> (i32, i32) {
    %c0_i32 = arith.constant 0 : i32
    %c0_i32_0 = arith.constant 0 : i32
    %c0_i32_1 = arith.constant 0 : i32
    return %c0_i32, %c0_i32_0 : i32, i32
  }
  func.func @transform_8(%arg0: i32, %arg1: i32) -> i32 {
    %c0_i32 = arith.constant 0 : i32
    %c0_i32_0 = arith.constant 0 : i32
    return %c0_i32 : i32
  }
  func.func @transform_9(%arg0: i32, %arg1: i32) -> (i32, i32, i32) {
    %c0_i32 = arith.constant 0 : i32
    %c0_i32_0 = arith.constant 0 : i32
    return %arg0, %arg1, %c0_i32 : i32, i32, i32
  }
}

</mosaic_0001>

<bundles_post_ra>
// kernel: tpu_custom_call.1
= control target key start
LH: loop header
LB: loop body
LE: loop exit
PB: predicated region body
PF: predicated region fallthrough
CT: control target
= control target key end

     0   :  { %s1468_s0 = inlined_call_operand.vmem [shape: f32[16,16], index: 0, kind: input, shape index: {}]   ;;  %s1469_s1 = inlined_call_operand.vmem [shape: f32[16,16], index: 1, kind: input, shape index: {}]   ;;  %s1470_s2 = inlined_call_operand.vmem [shape: f32[2,16,8], index: 2, kind: input, shape index: {}]   ;;  %s1471_s3 = inlined_call_operand.vmem [shape: f32[2,1,16], index: 3, kind: input, shape index: {}]   ;;  %s1472_s4 = inlined_call_operand.vmem [shape: f32[1,8], index: 4, kind: input, shape index: {}]   ;;  %s1473_s5 = inlined_call_operand.vmem [shape: f32[2,8], index: 5, kind: input, shape index: {}]   ;;  %s1474_s6 = inlined_call_operand.vmem [shape: f32[8,32], index: 6, kind: input, shape index: {}]   ;;  %s1475_s7 = inlined_call_operand.vmem [shape: f32[8,32], index: 7, kind: input, shape index: {}]   ;;  %s1476_s8 = inlined_call_operand.vmem [shape: f32[2], index: 8, kind: input, shape index: {}]   ;;  %s1477_s9 = inlined_call_operand.hbm [shape: f32[2,16,32], index: 9, kind: output, shape index: {}]  }
   0x1   :  { %1478 = sst [smem:[#allocation8_spill]] %s1470_s2 }
   0x2   :  { %1479 = sst [smem:[#allocation9_spill]] %s1472_s4 }
   0x3   :  { %1480 = sst [smem:[#allocation10_spill]] %s1476_s8 }
   0x4   :  { %14 = vsyncpa [#allocation4], 0 }
   0x5   :  { %15 = vsyncpa [#allocation3], 0 }
   0x6   :  { %17 = vsyncpa [#allocation3 + $0x1], 0  ;;  %s1286_s30 = smov 0   ;;  %s1288_s10 = smov 0  }
   0x7   :  { %s1290_s11 = smov 0   ;;  %s1292_s12 = smov 0  }
   0x8   :  { %s1294_s13 = smov 0   ;;  %s1296_s14 = smov 0  }
   0x9 LB: > { %s975_s15 = sadd.s32 4294967295, %s1230_s14   ;;  %s976_s16 = sadd.s32 4294967294, %s1230_s14   ;;  %s1230_s14 = sphi %s1296_s14, %s23_s14   ;;  %s1226_s13 = sphi %s1294_s13, %s1492_s13   ;;  %s1222_s12 = sphi %s1292_s12, %s1491_s12   ;;  %s1218_s11 = sphi %s1290_s11, %s1490_s11   ;;  %s1214_s10 = sphi %s1288_s10, %s1489_s10   ;;  %s1210_s30 = sphi %s1286_s30, %s1488_s30  }
   0xa   : > { %s35_s17 = sadd.s32 1, %s1226_s13  ;;  %s253_s18 = sadd.s32 1, %s1218_s11 }
   0xb   : > { %p37_p0 = scmp.ge.s32.totalorder %s35_s17, 2  ;;  %p263_p1 = scmp.ne.s32.totalorder %s1218_s11, %s1214_s10 }
   0xc   : > { %p264_p2 = scmp.eq.s32.totalorder %s975_s15, 1  ;;  %p269_p3 = scmp.ne.s32.totalorder %s1214_s10, %s1210_s30 }
   0xd   : > { %s1494_s17 = smov (%p37_p0, %s35_s17), 0  ;;  %p270_p5 = scmp.eq.s32.totalorder %s976_s16, 1 }
   0xe   : > { %p1326_p4 = por %p264_p2, %p263_p1  ;;  %s248_s20 = ssub.s32 %s1226_s13, %s1494_s17 }
   0xf   : > { %p977_p6 = scmp.ge.s32.totalorder %s1230_s14, 1  ;;  %p251_p7 = scmp.eq.s32.totalorder %s248_s20, 0 }
  0x10   : > { %p1333_p8 = por %p270_p5, %p269_p3  ;;  %p277_p9 = scmp.lt.s32.totalorder %s1230_s14, 3 }
  0x11   : > { %s1339_s22 = scalar_select %p251_p7, %s1218_s11, %s253_s18  }
  0x12   : > { %p1341_p10 = pnand %p977_p6, %p277_p9  ;;  %p1345_p11 = scmp.eq.s32.totalorder %s975_s15, 0 }
  0x13   : > { %s1485_s8 = sld [smem:[#allocation10_spill]] }
  0x14   : > { %p1063_p12 = pneg %p1341_p10 }
  0x16   : > { %p1064_p13 = pnand %p1345_p11, %p1063_p12 }
  0x18   : > { %p1135_p1 = pneg %p1064_p13 }
  0x19   : > { %s320_s27 = sshll.u32 %s1485_s8, 4  ;;  %s321_s27 = int_to_ptr.vmem [resolvable:$true] %s320_s27 }
  0x1a   : > { %s1133_s28 = scalar_lea.vmem %s321_s27, 16  ;;  %p1141_p5 = scmp.lt.s32.totalorder %s321_s27, %s321_s27 }
  0x1b   : > { %p1134_p0 = scmp.ne.s32.totalorder %s321_s27, %s1133_s28  ;;  %p1142_p6 = scmp.lt.s32.totalorder %s1133_s28, %s1133_s28 }
  0x1d   : > { %p1136_p2 = pnand %p1135_p1, %p1134_p0  ;;  %p1143_p7 = por %p1142_p6, %p1141_p5 }
  0x1f   : > { %p1137_p3 = pneg %p1136_p2 }
  0x21   : > { %p1144_p9 = pnand %p1143_p7, %p1137_p3 }
  0x23   : > { %1147 = shalt.err (!%p1144_p9)
}
  0x24   : > { %s1232_s29 = smov [#allocation2]   ;;  %347 = sbr.rel (%p1341_p10) target bundleno = 695 (0x2b7), region = 56 }
  0x25   : > { %1066 = dma.vmem_to_smem (!%p1064_p13), %s321_s27, 16, %s1232_s29, [#allocation4]  }
  0x2b   : > { %1201 = dma.done.wait (%p1345_p11), [#allocation4], 16  }
  0x2c   : > { %1203 = vsyncadd (%p1345_p11), [#allocation4], 4294967280 }
  0x2d   : > { %353 = sfence }
  0x2e   : > { %p409_p12 = scmp.lt.s32.totalorder %s1222_s12, 1  ;;  %s1486_s4 = sld [smem:[#allocation9_spill]]  ;;  %vm438_vm0 = vcmask 64512   ;;  %v419_v8 = vld [vmem:[%s1468_s0] sm:$0xff]  ;;  %v420_v14 = vld [vmem:[%s1468_s0 + $0x8] sm:$0xff]  ;;  %vm485_vm2 = vcmask 130048  }
  0x2f   : > { %s1487_s2 = sld [smem:[#allocation8_spill]]  ;;  %s445_s24 = sld [smem:[#allocation2]]  ;;  %v421_v9 = vld [vmem:[%s1469_s1] sm:$0xff]  ;;  %v422_v15 = vld [vmem:[%s1469_s1 + $0x8] sm:$0xff]  ;;  %vm830_vm4 = vcmask 261120  }
  0x30   : > { %s410_s15 = scalar_select %p409_p12, %s1222_s12, 1  ;;  %v477_v33 = vadd.f32 %v421_v9, %v419_v8  ;;  %v478_v34 = vadd.f32 %v422_v15, %v420_v14  ;;  %v667_v43 = vld [vmem:[%s1475_s7] sm:$0xff] }
  0x31   : > { %s988_s27 = sld [smem:[#allocation2 + $0x1]]  ;;  %1037 = vmatprep.subr.mxu0 %v667_v43  ;;  %v666_v44 = vld [vmem:[%s1474_s6] sm:$0xff] }
  0x32   : > { %s1007_s16 = sshll.u32 %s410_s15, 4  ;;  %s416_s26 = scalar_lea.vmem %s1471_s3, %s410_s15  ;;  %vm479_vm1 = vcmp.gt.f32.partialorder %v477_v33, 0.0  ;;  %vm480_vm3 = vcmp.gt.f32.partialorder %v478_v34, 0.0  ;;  %1038 = vmatpush3.msra.mxu0 %v667_v43  ;;  %v996_v47 = vld [vmem:[%s1473_s5] ss:$0 sm:$0xff] }
  0x33   : > { %v989_v16 = vld [vmem:[%s416_s26] ss:$0 sm:$0xff]  ;;  %1042 = vmatprep.subr.mxu0 %v666_v44  ;;  %v997_v48 = vld [vmem:[%s1473_s5 + $0x1] ss:$0 sm:$0xff]  ;;  %s1008_s26 = sshll.u32 %s1222_s12, 8  ;;  %s1233_s12 = smov [#allocation5]  }
  0x34   : > { %v987_v0 = vld [vmem:[%s1486_s4] ss:$0 sm:$0xff]  ;;  %s1420_s4 = scalar_lea.hbm %s1477_s9, %s1008_s26 }
  0x35   : > { %s413_s23 = scalar_lea.vmem %s1487_s2, %s1007_s16  ;;  %v446_v10 = vstv %s445_s24  ;;  %s394_s16 = sand.u32 1, %s1214_s10  }
  0x36   : > { %v1370_v1 = vld [vmem:[%s413_s23] sm:$0xff]  ;;  %v1372_v2 = vld [vmem:[%s413_s23 + $0x8] sm:$0xff]  ;;  %v447_v12 = vmul.f32 %v446_v10, %v419_v8  ;;  %v448_v18 = vmul.f32 %v446_v10, %v420_v14  ;;  %s984_s18 = sshll.u32 %s394_s16, 4  ;;  %s1422_s8 = scalar_lea.sflag [#allocation3], %s394_s16 }
  0x37   : > { %v436_v3 = vmul.f32 %v987_v0, %v1370_v1  ;;  %v437_v4 = vmul.f32 %v987_v0, %v1372_v2  ;;  %v1047_v7 = vpack.c.bf16 %v1372_v2, %v1370_v1  ;;  %v450_v11 = vstv %s988_s27  ;;  %s396_s20 = scalar_lea.vmem [#allocation5], %s984_s18  ;;  %s1152_s24 = sshll.u32 %s1233_s12, 4  ;;  %s1153_s24 = int_to_ptr.vmem [resolvable:$false] %s1152_s24 }
  0x38   : > { %v451_v13 = vmul.f32 %v450_v11, %v421_v9  ;;  %v452_v19 = vmul.f32 %v450_v11, %v422_v15  ;;  %s849_s25 = sshll.u32 %s396_s20, 4  ;;  %s1154_s27 = scalar_lea.vmem %s1153_s24, 512  ;;  %s1415_s25 = int_to_ptr.vmem [resolvable:$true] %s849_s25 }
  0x39   : > { %v439_v5 = vsel %vm438_vm0, %v436_v3, 0.0  ;;  %v442_v6 = vsel %vm438_vm0, %v437_v4, 0.0  ;;  %1048 = vmatprep.subr.bf16.mxu1 %v1047_v7  ;;  %s1148_s15 = scalar_lea.vmem %s1415_s25, 256  ;;  %p1155_p0 = scmp.lt.s32.totalorder %s1415_s25, %s1153_s24 }
  0x3a   : > { %440 = vadd.xlane.f32.xlu0 %v439_v5  ;;  %1050 = vmatpush3.bf16.msra.mxu1 %v1047_v7  ;;  %v453_v17 = vadd.f32 %v451_v13, %v447_v12  ;;  %v454_v23 = vadd.f32 %v452_v19, %v448_v18  ;;  %p1149_p10 = scmp.ne.s32.totalorder %s1415_s25, %s1148_s15  ;;  %p1156_p1 = scmp.lt.s32.totalorder %s1154_s27, %s1148_s15 }
  0x3b   : > { %1052 = vmatprep.subr.bf16.mxu1 %v1047_v7 }
  0x3c   : > { %p1150_p11 = pnand %p1149_p10, %p1326_p4  ;;  %p1157_p2 = por %p1156_p1, %p1155_p0 }
  0x3e   : > { %443 = vadd.xlane.f32.xlu0 %v442_v6  ;;  %p1151_p13 = pneg %p1150_p11 }
  0x40   : > { %p1158_p3 = pnand %p1157_p2, %p1151_p13 }
  0xc7   : > { %v441_v20 = vpop.xlane.xlu0 %440 }
  0xc8   : > { %v461_v21 = vadd.f32 %v989_v16, %v441_v20 }
  0xca   : > { %v463_v22 = vadd.f32 %v461_v21, %v453_v17 }
  0xcb   : > { %v444_v24 = vpop.xlane.xlu0 %443 }
  0xcc   : > { %v990_v25 = vmul.f32 -1.442695, %v463_v22  ;;  %v462_v26 = vadd.f32 %v989_v16, %v444_v24 }
  0xce   : > { %1125 = vpow2.f32 %v990_v25  ;;  %v464_v27 = vadd.f32 %v462_v26, %v454_v23 }
  0xd0   : > { %v991_v28 = vmul.f32 -1.442695, %v464_v27 }
  0xd2   : > { %1127 = vpow2.f32 %v991_v28 }
  0xd8   : > { %v1126_v29 = vpop.eup %1125 }
  0xd9   : > { %v471_v30 = vadd.f32 1.0, %v1126_v29 }
  0xdb   : > { %1129 = vrcp.f32 %v471_v30 }
  0xdc   : > { %v1128_v31 = vpop.eup %1127 }
  0xdd   : > { %v472_v32 = vadd.f32 1.0, %v1128_v31 }
  0xdf   : > { %1131 = vrcp.f32 %v472_v32 }
  0xe5   : > { %v1130_v35 = vpop.eup %1129 }
  0xe6   : > { %v481_v36 = vsel %vm479_vm1, %v1130_v35, 0.0 }
  0xe7   : > { %v483_v37 = vmul.f32 %v481_v36, %v419_v8  ;;  %v567_v41 = vmul.f32 %v481_v36, %v421_v9 }
  0xe9   : > { %v1132_v38 = vpop.eup %1131  ;;  %1027 = vmatprep.mubr.msk.f32.mxu1 %vm485_vm2, %v483_v37 }
  0xea   : > { %v482_v39 = vsel %vm480_vm3, %v1132_v38, 0.0 }
  0xeb   : > { %v484_v40 = vmul.f32 %v482_v39, %v420_v14  ;;  %v568_v42 = vmul.f32 %v482_v39, %v422_v15 }
  0xed   : > { %1028 = vmatmul.mubr.msk.f32.vlgmr.msra.gmra.mrb[0].mxu1 %vm485_vm2, %v484_v40 }
  0xee   : > { %1054 = vmatpush3.bf16.msra.mxu1 %v1047_v7  ;;  %1034 = vmatprep.mubr.msk.f32.mxu1 %vm485_vm2, %v567_v41 }
  0xf1   : > { %1035 = vmatmul.mubr.msk.f32.vlgmr.msra.gmra.mrb[2].mxu1 %vm485_vm2, %v568_v42 }
 0x1c0   : > { %v1029_v45 = vpop.f32.mrb[0].mxu1 }
 0x1c1   : > { %v558_v46 = vpop.f32.mrb[1].mxu1  ;;  %v656_v50 = vmul.f32 %v1029_v45, %v996_v47 }
 0x1c2   : > { %v655_v53 = vmul.f32 %v996_v47, %v558_v46 }
 0x1c4   : > { %v1036_v49 = vpop.f32.mrb[2].mxu1 }
 0x1c5   : > { %v663_v51 = vmul.f32 %v1036_v49, %v997_v48  ;;  %v641_v52 = vpop.f32.mrb[3].mxu1 }
 0x1c6   : > { %v662_v54 = vmul.f32 %v997_v48, %v641_v52 }
 0x1c7   : > { %v665_v55 = vadd.f32 %v663_v51, %v656_v50 }
 0x1c8   : > { %v664_v56 = vadd.f32 %v662_v54, %v655_v53 }
 0x1ca   : > { %1039 = vmatprep.mubr.msk.f32.mxu0 %vm438_vm0, %v664_v56 }
 0x1cb   : > { %1040 = vmatmul.mubr.msk.f32.vlgmr.msra.gmra.mrb[0].mxu0 %vm438_vm0, %v665_v55 }
 0x1cc   : > { %1043 = vmatpush3.msra.mxu0 %v666_v44  ;;  %1044 = vmatprep.mubr.msk.f32.mxu0 %vm438_vm0, %v1370_v1 }
 0x1d3   : > { %1045 = vmatmul.mubr.msk.f32.vlgmr.msra.gmra.mrb[0].mxu0 %vm438_vm0, %v1372_v2 }
 0x2a6   : > { %v1046_v57 = vpop.f32.mrb[0].mxu0 }
 0x2a7   : > { %832 = vst.msk [vmem:[%s396_s20 + $0x8] sm:$0xff] %vm830_vm4, %v1046_v57  ;;  %v821_v58 = vpop.f32.mrb[1].mxu0 }
 0x2a8   : > { %831 = vst.msk [vmem:[%s396_s20] sm:$0xff] %vm830_vm4, %v821_v58 }
 0x2a9   : > { %1161 = shalt.err (!%p1158_p3)
}
 0x2aa   : > { %s1162_s28 = scalar_lea.hbm %s1420_s4, 256  ;;  %s1166_s18 = scalar_lea.hbm %s1477_s9, 512 }
 0x2ab   : > { %p1163_p5 = scmp.ne.s32.totalorder %s1420_s4, %s1162_s28  ;;  %p1167_p9 = scmp.lt.u32.totalorder %s1420_s4, %s1477_s9 }
 0x2ac   : > { %p1168_p12 = scmp.lt.u32.totalorder %s1166_s18, %s1162_s28  ;;  %p1170_p11 = scmp.lt.u32.totalorder %s1162_s28, %s1420_s4 }
 0x2ad   : > { %p1164_p6 = pnand %p1163_p5, %p1326_p4 }
 0x2ae   : > { %p1169_p10 = por %p1168_p12, %p1167_p9 }
 0x2af   : > { %p1165_p7 = pneg %p1164_p6 }
 0x2b0   : > { %p1171_p13 = por %p1170_p11, %p1169_p10 }
 0x2b2   : > { %p1172_p0 = pnand %p1171_p13, %p1165_p7 }
 0x2b4   : > { %1175 = shalt.err (!%p1172_p0)
}
 0x2b5   : > { %s1234_s23 = smov 128   ;;  %s1235_s2 = smov 8  }
 0x2b6   : > { %1061 = dma.vmem_to_hbm [thread:$0]  (%p1326_p4), %s1415_s25, 256, %s1420_s4, %s1422_s8, %s1234_s23, %s1234_s23, %s1235_s2  }
 0x2b7 PF: > { %p1073_p1 = scmp.ge.s32.totalorder %s1230_s14, 2  ;;  %s864_s15 = sand.u32 1, %s1210_s30  }
 0x2b8   : > { %s865_s12 = scalar_lea.sflag [#allocation3], %s864_s15 }
 0x2b9   : > { %p1068_p2 = pnand %p1073_p1, %p1333_p8 }
 0x2bb   : > { %1205 = dma.done.wait (!%p1068_p2), %s865_s12, 256  }
 0x2bc   : > { %1207 = vsyncadd (!%p1068_p2), %s865_s12, 4294967040  ;;  %s23_s14 = sadd.s32 1, %s1230_s14   ;;  %s1488_s30 = smov %s1214_s10 }
 0x2bd   : > { %p20_p3 = scmp.ge.s32.totalorder %s23_s14, 4   ;;  %s1489_s10 = smov %s1218_s11 }
 0x2be   : > { %s1490_s11 = smov %s1339_s22  ;;  %s1491_s12 = smov %s1226_s13 }
 0x2bf   : > { %s1492_s13 = smov %s1494_s17  ;;  %22 = sbr.rel (!%p20_p3) target bundleno = 9 (0x9), region = 106 }
 0x2c6   :  { %870 = vsyncpa [#allocation3], 1 }
 0x2c7   :  { %872 = vsyncpa [#allocation3 + $0x1], 1 }
 0x2c8   :  { %873 = vsyncpa [#allocation4], 1 }
 0x2c9   :  { %875 = vsyncpa [#allocation4 + $0x1], 1 }

</bundles_post_ra>
